<compile_context>
chip_gen: v5e
topology: v5e:2x2
jax: 0.10.0
libtpu: 0.0.40
codegen_flags: <defaults>
</compile_context>

<pallas_src>
import math

import jax
import jax.numpy as jnp
from jax.experimental import pallas as pl
from jax.experimental.pallas import tpu as pltpu


def _residual_conv1x1_kernel(x_ref, w_ref, b_ref, o_ref):
    # x_ref: (1, C, T) tile — channels on sublanes, spatial pixels on lanes.
    x = x_ref[0]                                                     # (C, T)
    # fn(x): 1x1 conv == per-pixel matmul over channels, on the MXU.
    # (x is cast to the weight dtype only when the wrapper chose bf16 MXU ops.)
    z = jnp.dot(w_ref[...], x.astype(w_ref.dtype),
                preferred_element_type=jnp.float32)                  # (C, T) f32
    # + bias (broadcast over lanes) + residual add, all in f32, single cast out.
    z = z + b_ref[...] + x.astype(jnp.float32)
    o_ref[0] = z.astype(o_ref.dtype)


def _vmem_budget():
    """Generation-aware (per-buffer tile budget, scoped VMEM limit) in bytes."""
    try:
        vmem_cap = int(pltpu.get_tpu_info().vmem_capacity_bytes)
    except Exception:
        vmem_cap = 64 << 20  # conservative: assume the smallest (v7x) VMEM
    # Budget for 2x(x) + 2x(out) double-buffered tiles plus weight/bias, with
    # plenty of headroom: per-buffer tile <= vmem/16, scoped limit <= vmem/2.
    max_tile_bytes = min(8 << 20, vmem_cap // 16)   # 8 MiB on v5e/v6e, 4 MiB on v7x
    vmem_limit = min(64 << 20, vmem_cap // 2)       # 64 MiB on v5e/v6e, 32 MiB on v7x
    return max_tile_bytes, vmem_limit


def _pick_tile_hw(N, C, HW, itemsize, max_tile_bytes, *, target_steps=8, min_tile=512):
    """Largest lane-dense spatial tile that fits the budget AND leaves >= target_steps
    grid steps for pipelining / megacore sharding (never shrinking below ~512 lanes)."""
    max_tile_elems = max(128, (max_tile_bytes // max(1, C * itemsize)) // 128 * 128)

    if HW % 128 == 0:
        # Exact divisors of HW that are multiples of 128 -> no ragged tail at all.
        g = HW // 128
        divisors = set()
        d = 1
        while d * d <= g:
            if g % d == 0:
                divisors.add(d)
                divisors.add(g // d)
            d += 1
        cands = sorted((128 * d for d in divisors if 128 * d <= max_tile_elems),
                       reverse=True)
        if not cands:
            cands = [128]
        floor_tile = min(HW, min_tile)
        for t in cands:                      # largest tile that still gives enough steps
            if t < floor_tile:
                break
            if N * (HW // t) >= target_steps:
                return t
        geq = [t for t in cands if t >= floor_tile]
        return min(geq) if geq else cands[0]

    # Ragged spatial extent: tile in 128-lane multiples; Pallas masks the tail block.
    if HW < 128:
        return HW                            # full-extent block (== array dim) is allowed
    floor_tile = min((HW // 128) * 128, min_tile)
    tile = min((HW // 128) * 128, max_tile_elems)
    # Shrink (halving, 128-aligned) until there are enough grid steps to pipeline.
    while N * (-(-HW // tile)) < target_steps and tile > floor_tile:
        tile = max(floor_tile, (tile // 2) // 128 * 128)
    return tile


def residual_conv1x1_pallas(x_nchw, w, b):
    """out = Conv2d_1x1(x; w, b) + x,  x_nchw: (N, C, H, W), w: (Cout=C, Cin=C), b: (C,)."""
    N, C, H, W = x_nchw.shape
    HW = H * W
    itemsize = jnp.dtype(x_nchw.dtype).itemsize

    max_tile_bytes, vmem_limit = _vmem_budget()
    tile_hw = _pick_tile_hw(N, C, HW, itemsize, max_tile_bytes)
    num_spatial_tiles = pl.cdiv(HW, tile_hw)
    grid = (N, num_spatial_tiles)

    # Free reshape (NCHW is contiguous over the trailing spatial dims).
    x3 = x_nchw.reshape(N, C, HW)

    # bf16 MXU operands only pay off when the matmul is non-trivial (large C);
    # for small C the kernel is HBM-bound and f32 keeps the result bit-exact.
    mxu_dtype = jnp.bfloat16 if C >= 256 else x_nchw.dtype
    w2 = w.astype(mxu_dtype)                    # (Cout, Cin), resident in VMEM
    b2 = b.reshape(C, 1).astype(jnp.float32)    # broadcast over lanes in-kernel

    cost = pl.CostEstimate(
        flops=2 * N * C * C * HW + 2 * N * C * HW,
        transcendentals=0,
        bytes_accessed=2 * N * C * HW * itemsize + C * C * itemsize + C * 4,
    )

    out = pl.pallas_call(
        _residual_conv1x1_kernel,
        out_shape=jax.ShapeDtypeStruct((N, C, HW), x_nchw.dtype),
        grid_spec=pltpu.PrefetchScalarGridSpec(
            num_scalar_prefetch=0,
            grid=grid,
            in_specs=[
                pl.BlockSpec((1, C, tile_hw), lambda n, j: (n, 0, j)),  # x tile
                pl.BlockSpec((C, C), lambda n, j: (0, 0)),              # conv weight
                pl.BlockSpec((C, 1), lambda n, j: (0, 0)),              # conv bias
            ],
            out_specs=pl.BlockSpec((1, C, tile_hw), lambda n, j: (n, 0, j)),
        ),
        compiler_params=pltpu.CompilerParams(
            dimension_semantics=("parallel", "parallel"),
            vmem_limit_bytes=vmem_limit,
        ),
        cost_estimate=cost,
    )(x3, w2, b2)

    return out.reshape(N, C, H, W)


def residual_conv1x1_reference(x, w, b):
    """Pure-JAX reference mirroring the PyTorch forward: fn(x) + x."""
    fn_x = jnp.einsum("nchw,dc->ndhw", x.astype(jnp.float32), w.astype(jnp.float32))
    fn_x = fn_x + b.reshape(1, -1, 1, 1).astype(jnp.float32)
    return (fn_x + x.astype(jnp.float32)).astype(x.dtype)


if __name__ == "__main__":
    key = jax.random.PRNGKey(0)
    N, C, H, W = 2, 8, 16, 16

    kx, kw, kb = jax.random.split(key, 3)
    x = jax.random.normal(kx, (N, C, H, W), dtype=jnp.float32)

    # fn = Conv2d(dim, dim, 1): deterministic synthetic weights (PyTorch-style init).
    fan_in = C
    bound = 1.0 / math.sqrt(fan_in)
    w = jax.random.uniform(kw, (C, C), minval=-bound, maxval=bound, dtype=jnp.float32)
    b = jax.random.uniform(kb, (C,), minval=-bound, maxval=bound, dtype=jnp.float32)

    out = jax.block_until_ready(residual_conv1x1_pallas(x, w, b))

    ref = residual_conv1x1_reference(x, w, b)
    assert out.shape == (N, C, H, W)
    assert jnp.allclose(out, ref, atol=1e-5, rtol=1e-5), (
        float(jnp.max(jnp.abs(out - ref))))

    print("KERNEL_OK")
</pallas_src>

<mosaic_0001>
module attributes {stable_mosaic.version = 11 : i64} {
  func.func @_residual_conv1x1_kernel(%arg0: i32, %arg1: i32, %arg2: memref<1x8x256xf32, #tpu.memory_space<vmem>>, %arg3: memref<8x8xf32, #tpu.memory_space<vmem>>, %arg4: memref<8x1xf32, #tpu.memory_space<vmem>>, %arg5: memref<1x8x256xf32, #tpu.memory_space<vmem>>) attributes {dimension_semantics = [#tpu.dimension_semantics<parallel>, #tpu.dimension_semantics<parallel>], iteration_bounds = array<i64: 2, 1>, scalar_prefetch = 0 : i64, scratch_operands = 0 : i64, tpu.core_type = #tpu.core_type<tc>, window_params = [{transform_indices = @transform_0, window_bounds = array<i64: 1, 8, 256>}, {pipeline_mode = #tpu.pipeline_mode<synchronous>, transform_indices = @transform_1, window_bounds = array<i64: 8, 8>}, {pipeline_mode = #tpu.pipeline_mode<synchronous>, transform_indices = @transform_2, window_bounds = array<i64: 8, 1>}, {transform_indices = @transform_3, window_bounds = array<i64: 1, 8, 256>}]} {
    %c0 = arith.constant 0 : index
    %c0_0 = arith.constant 0 : index
    %c0_1 = arith.constant 0 : index
    %0 = vector.load %arg2[%c0, %c0_0, %c0_1] : memref<1x8x256xf32, #tpu.memory_space<vmem>>, vector<1x8x256xf32>
    %1 = vector.shape_cast %0 : vector<1x8x256xf32> to vector<8x256xf32>
    %c0_2 = arith.constant 0 : index
    %c0_3 = arith.constant 0 : index
    %2 = vector.load %arg3[%c0_2, %c0_3] : memref<8x8xf32, #tpu.memory_space<vmem>>, vector<8x8xf32>
    %cst = arith.constant dense<0.000000e+00> : vector<8x256xf32>
    %3 = tpu.matmul %2, %1, %cst {dimension_numbers = #tpu.dot_dimension_numbers<[1], [0], [0], [1], [0, 0, 1, 1], [], []>} : vector<8x8xf32>, vector<8x256xf32>, vector<8x256xf32> -> vector<8x256xf32>
    %c0_4 = arith.constant 0 : index
    %c0_5 = arith.constant 0 : index
    %4 = vector.load %arg4[%c0_4, %c0_5] : memref<8x1xf32, #tpu.memory_space<vmem>>, vector<8x1xf32>
    %5 = vector.broadcast %4 : vector<8x1xf32> to vector<8x256xf32>
    %6 = arith.addf %3, %5 : vector<8x256xf32>
    %7 = arith.addf %6, %1 : vector<8x256xf32>
    %c0_6 = arith.constant 0 : index
    %c0_7 = arith.constant 0 : index
    %c0_8 = arith.constant 0 : index
    %8 = vector.load %arg5[%c0_6, %c0_7, %c0_8] : memref<1x8x256xf32, #tpu.memory_space<vmem>>, vector<1x8x256xf32>
    %9 = vector.shape_cast %8 : vector<1x8x256xf32> to vector<8x256xf32>
    %10 = vector.shape_cast %7 : vector<8x256xf32> to vector<1x8x256xf32>
    tpu.vector_store %arg5[%c0_6, %c0_7, %c0_8], %10 {strides = array<i32>} : memref<1x8x256xf32, #tpu.memory_space<vmem>>, vector<1x8x256xf32>,
    return
  }
  func.func @transform_0(%arg0: i32, %arg1: i32) -> (i32, i32, i32) {
    %c0_i32 = arith.constant 0 : i32
    %c0_i32_0 = arith.constant 0 : i32
    return %arg0, %c0_i32, %arg1 : i32, i32, i32
  }
  func.func @transform_1(%arg0: i32, %arg1: i32) -> (i32, i32) {
    %c0_i32 = arith.constant 0 : i32
    %c0_i32_0 = arith.constant 0 : i32
    %c0_i32_1 = arith.constant 0 : i32
    return %c0_i32, %c0_i32_0 : i32, i32
  }
  func.func @transform_2(%arg0: i32, %arg1: i32) -> (i32, i32) {
    %c0_i32 = arith.constant 0 : i32
    %c0_i32_0 = arith.constant 0 : i32
    %c0_i32_1 = arith.constant 0 : i32
    return %c0_i32, %c0_i32_0 : i32, i32
  }
  func.func @transform_3(%arg0: i32, %arg1: i32) -> (i32, i32, i32) {
    %c0_i32 = arith.constant 0 : i32
    %c0_i32_0 = arith.constant 0 : i32
    return %arg0, %c0_i32, %arg1 : i32, i32, i32
  }
}

</mosaic_0001>

<bundles_post_ra>
// kernel: tpu_custom_call.1
= control target key start
LH: loop header
LB: loop body
LE: loop exit
PB: predicated region body
PF: predicated region fallthrough
CT: control target
= control target key end

     0   :  { %8 = vsyncpa [#allocation3], 0  ;;  %s713_s0 = inlined_call_operand.hbm [shape: f32[2,8,256], index: 0, kind: input, shape index: {}]   ;;  %s714_s1 = inlined_call_operand.vmem [shape: f32[8,8], index: 1, kind: input, shape index: {}]   ;;  %s715_s2 = inlined_call_operand.vmem [shape: f32[8,1], index: 2, kind: input, shape index: {}]   ;;  %s716_s3 = inlined_call_operand.hbm [shape: f32[2,8,256], index: 3, kind: output, shape index: {}]  }
   0x1   :  { %10 = vsyncpa [#allocation3 + $0x1], 0 }
   0x2   :  { %11 = vsyncpa [#allocation4], 0 }
   0x3   :  { %13 = vsyncpa [#allocation4 + $0x1], 0  ;;  %s587_s12 = smov 0   ;;  %s589_s13 = smov 0  }
   0x4   :  { %s591_s14 = smov 0   ;;  %s593_s15 = smov 0  }
   0x5   :  { %s595_s16 = smov 0   ;;  %s597_s17 = smov 0  }
   0x6 LB: > { %s369_s18 = sadd.s32 4294967295, %s564_s17   ;;  %s370_s19 = sadd.s32 4294967294, %s564_s17   ;;  %s564_s17 = sphi %s597_s17, %s19_s17   ;;  %s560_s16 = sphi %s595_s16, %s725_s16   ;;  %s556_s15 = sphi %s593_s15, %s724_s15   ;;  %s552_s14 = sphi %s591_s14, %s723_s14   ;;  %s548_s13 = sphi %s589_s13, %s722_s13   ;;  %s544_s12 = sphi %s587_s12, %s721_s12  }
   0x7   : > { %s31_s20 = sadd.s32 1, %s560_s16  ;;  %s40_s21 = sadd.s32 1, %s552_s14 }
   0x8   : > { %p33_p0 = scmp.ge.s32.totalorder %s31_s20, 2  ;;  %p47_p1 = scmp.ne.s32.totalorder %s552_s14, %s548_s13 }
   0x9   : > { %p48_p2 = scmp.eq.s32.totalorder %s564_s17, 0  ;;  %p53_p3 = scmp.ne.s32.totalorder %s548_s13, %s544_s12 }
   0xa   : > { %s727_s20 = smov (%p33_p0, %s31_s20), 0  ;;  %p54_p5 = scmp.eq.s32.totalorder %s369_s18, 0 }
   0xb   : > { %p628_p4 = por %p48_p2, %p47_p1  ;;  %s35_s23 = ssub.s32 %s560_s16, %s727_s20 }
   0xc   : > { %p121_p6 = scmp.eq.s32.totalorder %s369_s18, 1  ;;  %p38_p7 = scmp.eq.s32.totalorder %s35_s23, 0 }
   0xd   : > { %p634_p8 = por %p54_p5, %p53_p3  ;;  %p127_p10 = scmp.eq.s32.totalorder %s370_s19, 1 }
   0xe   : > { %p638_p9 = por %p121_p6, %p47_p1  ;;  %p372_p12 = scmp.ge.s32.totalorder %s564_s17, 2 }
   0xf   : > { %s643_s26 = scalar_select %p38_p7, %s552_s14, %s40_s21  }
  0x10   : > { %p645_p11 = por %p127_p10, %p53_p3  ;;  %p400_p13 = scmp.lt.s32.totalorder %s564_s17, 2 }
  0x11   : > { %s153_s28 = sand.u32 1, %s552_s14   ;;  %s386_s30 = sshll.u32 %s560_s16, 4 }
  0x12   : > { %s373_s29 = sshll.u32 %s153_s28, 4  ;;  %s164_s6 = scalar_lea.hbm %s713_s0, %s386_s30 }
  0x13   : > { %s157_s7 = scalar_lea.vmem [#allocation2], %s373_s29  ;;  %s166_s9 = sshll.u32 %s164_s6, 4  ;;  %s167_s9 = int_to_ptr.hbm [resolvable:$true] %s166_s9 }
  0x14   : > { %s168_s8 = sshll.u32 %s157_s7, 4  ;;  %p393_p0 = pnand %p400_p13, %p628_p4  ;;  %s169_s8 = int_to_ptr.vmem [resolvable:$true] %s168_s8 }
  0x15   : > { %p376_p1 = scmp.ge.s32.totalorder %s564_s17, 1  ;;  %p173_p2 = scmp.lt.s32.totalorder %s564_s17, 3 }
  0x16   : > { %s154_s10 = scalar_lea.sflag [#allocation3], %s153_s28 }
  0x17   : > { %395 = dma.hbm_to_vmem [thread:$0]  (!%p393_p0), %s167_s9, 256, %s169_s8, %s154_s10  }
  0x18   : > { %p174_p3 = pnand %p376_p1, %p173_p2 }
  0x19   : > { %s661_s11 = sand.u32 (!%p174_p3), 1, %s548_s13  }
  0x1a   : > { %177 = sbr.rel (%p174_p3) target bundleno = 168 (0xa8), region = 32  ;;  %s377_s18 = sshll.u32 (!%p174_p3), %s661_s11, 4 }
  0x1b   : > { %s180_s19 = scalar_lea.sflag (!%p174_p3), [#allocation3], %s661_s11  ;;  %s183_s21 = scalar_lea.vmem (!%p174_p3), [#allocation2], %s377_s18 }
  0x1f   : > { %535 = dma.done.wait (%p634_p8), %s180_s19, 256  }
  0x20   : > { %537 = vsyncadd (%p634_p8), %s180_s19, 4294967040  ;;  %v566_v0 = vmov 0   ;;  %vm218_vm0 = vcmask 64512   ;;  %v209_v1 = vld [vmem:[%s183_s21] sm:$0xff]  ;;  %v210_v2 = vld [vmem:[%s183_s21 + $0x8] sm:$0xff]  ;;  %s387_s24 = sshll.u32 %s556_s15, 4 }
  0x21   : > { %451 = vset.pattern.permute.xlu0 %v566_v0  ;;  %v211_v3 = vld [vmem:[%s714_s1] sm:$0xff]  ;;  %237 = vmatpush.msra.mxu0 %v209_v1  ;;  %s280_s5 = scalar_lea.hbm %s716_s3, %s387_s24  ;;  %s206_s6 = scalar_lea.vmem [#allocation5], %s377_s18 }
  0x22   : > { %257 = vmatpush.msra.mxu1 %v210_v2  ;;  %v212_v4 = vld [vmem:[%s715_s2] sm:$0xff]  ;;  %379 = vmatmul.msk.f32.vlgmr.msra.gmra.mxu0 %vm218_vm0, %v211_v3  ;;  %s282_s7 = sshll.u32 %s206_s6, 4  ;;  %s284_s8 = sshll.u32 %s280_s5, 4  ;;  %s283_s7 = int_to_ptr.vmem [resolvable:$true] %s282_s7  ;;  %s285_s8 = int_to_ptr.hbm [resolvable:$true] %s284_s8 }
  0x23   : > { %380 = vmatmul.msk.f32.vlgmr.msra.gmra.mxu1 %vm218_vm0, %v211_v3  ;;  %215 = vperm.xlu0 %451, %v212_v4   ;;  %s267_s15 = scalar_lea.sflag [#allocation4], %s661_s11  ;;  %s496_s9 = sshra.s32 %s285_s8, 4  ;;  %s497_s9 = int_to_ptr.hbm [resolvable:$true] %s496_s9 }
  0x24   : > { %s498_s10 = scalar_lea.hbm %s497_s9, 16  ;;  %s502_s18 = scalar_lea.hbm %s716_s3, 32 }
  0x25   : > { %p499_p4 = scmp.ne.s32.totalorder %s497_s9, %s498_s10  ;;  %p503_p7 = scmp.lt.s32.totalorder %s497_s9, %s716_s3 }
  0x26   : > { %p504_p8 = scmp.lt.s32.totalorder %s502_s18, %s498_s10 }
  0x27   : > { %p500_p5 = pnand %p499_p4, %p638_p9 }
  0x28   : > { %p505_p10 = por %p504_p8, %p503_p7 }
  0x29   : > { %p501_p6 = pneg %p500_p5 }
  0x2b   : > { %p506_p13 = pnand %p505_p10, %p501_p6 }
  0x95   : > { %v216_v5 = vpop.permute.xlu0 %215 }
  0x9f   : > { %v239_v6 = vpop.f32.mrf.mxu0 }
  0xa0   : > { %v259_v7 = vpop.f32.mrf.mxu1  ;;  %v240_v8 = vadd.f32 %v239_v6, %v216_v5 }
  0xa1   : > { %v260_v9 = vadd.f32 %v259_v7, %v216_v5 }
  0xa2   : > { %v262_v10 = vadd.f32 %v240_v8, %v209_v1 }
  0xa3   : > { %v263_v11 = vadd.f32 %v260_v9, %v210_v2 }
  0xa4   : > { %264 = vst [vmem:[%s206_s6] sm:$0xff] %v262_v10 }
  0xa5   : > { %265 = vst [vmem:[%s206_s6 + $0x8] sm:$0xff] %v263_v11 }
  0xa6   : > { %509 = shalt.err (!%p506_p13)
}
  0xa7   : > { %390 = dma.vmem_to_hbm [thread:$0]  (%p638_p9), %s283_s7, 256, %s285_s8, %s267_s15  }
  0xa8 PF: > { %s296_s11 = sand.u32 1, %s544_s12   ;;  %p397_p0 = pnand %p372_p12, %p645_p11 }
  0xa9   : > { %s297_s28 = scalar_lea.sflag [#allocation4], %s296_s11 }
  0xaa   : > { %p398_p1 = pneg %p397_p0 }
  0xac   : > { %539 = dma.done.wait (%p398_p1), %s297_s28, 256  }
  0xad   : > { %541 = vsyncadd (%p398_p1), %s297_s28, 4294967040  ;;  %s19_s17 = sadd.s32 1, %s564_s17   ;;  %s721_s12 = smov %s548_s13 }
  0xae   : > { %p16_p2 = scmp.ge.s32.totalorder %s19_s17, 4   ;;  %s722_s13 = smov %s552_s14 }
  0xaf   : > { %s723_s14 = smov %s643_s26  ;;  %s724_s15 = smov %s560_s16 }
  0xb0   : > { %s725_s16 = smov %s727_s20  ;;  %18 = sbr.rel (!%p16_p2) target bundleno = 6 (0x6), region = 77 }
  0xb5   :  { %303 = vsyncpa [#allocation3], 1 }
  0xb6   :  { %305 = vsyncpa [#allocation3 + $0x1], 1 }
  0xb7   :  { %306 = vsyncpa [#allocation4], 1 }
  0xb8   :  { %308 = vsyncpa [#allocation4 + $0x1], 1 }

</bundles_post_ra>
